<compile_context>
chip_gen: v5e
topology: v5e:2x2
jax: 0.10.0
libtpu: 0.0.40
codegen_flags: <defaults>
</compile_context>

<pallas_src>
import functools

import jax
import jax.numpy as jnp
from jax.experimental import pallas as pl
from jax.experimental.pallas import tpu as pltpu

HIDDEN = 16             # hidden width of the PyTorch module
LANE = 128              # TPU lane width: every feature dim is padded to this
NUM_LAYERS = 4
BIAS_ROWS = 8           # bias slab sublane-padded to 8 rows
MAX_BATCH_BLOCK = 2048  # rows per grid step; ~1 MiB of activation VMEM per buffer


def _round_up(x, m):
    return ((x + m - 1) // m) * m


def _pick_batch_block(batch):
    """Sublane-aligned batch block; >=2 grid steps when there is enough work."""
    if batch <= 8:
        return 8
    # At least two blocks so the "parallel" grid axis can shard across v7x's
    # two TensorCores; the extra grid step costs ~0.35us on 1-TC chips.
    half = _round_up(pl.cdiv(batch, 2), 8)
    return min(half, MAX_BATCH_BLOCK)


# ----------------------------------------------------------------------------
# Kernel: fused (Linear+ReLU) x3 + Linear, one batch block per grid step.
# ----------------------------------------------------------------------------
def _mlp_kernel(x_ref, w_ref, b_ref, o_ref, *, k1, output_size):
    """Four MXU matmuls (bf16 operands, f32 accumulate) + f32 bias/ReLU.

    Zero padding makes the 128-wide matmuls numerically identical to the
    16-wide ones: padded lanes of every hidden activation are exactly 0
    (0 @ W + 0 bias), ReLU keeps them 0, and padded rows of the next weight
    plane contribute nothing.
    """
    x = x_ref[...].astype(jnp.bfloat16)                       # (bb, k1)

    # Layer 1: contract over the sublane-tile-aligned first k1 rows of W1.
    h = jnp.dot(x, w_ref[0, :k1, :], preferred_element_type=jnp.float32)
    h = jnp.maximum(h + b_ref[0:1, :], 0.0)

    # Layers 2 and 3 (static unroll -> two more MXU passes).
    for l in (1, 2):
        h = jnp.dot(h.astype(jnp.bfloat16), w_ref[l],
                    preferred_element_type=jnp.float32)
        h = jnp.maximum(h + b_ref[l:l + 1, :], 0.0)

    # Output layer (no ReLU). Store only the real output columns; lanes
    # >= output_size of `out` are exactly zero anyway.
    out = jnp.dot(h.astype(jnp.bfloat16), w_ref[3],
                  preferred_element_type=jnp.float32)
    out = out + b_ref[3:4, :]
    o_ref[...] = out[:, :output_size]


# ----------------------------------------------------------------------------
# Forward wrapper.
# ----------------------------------------------------------------------------
@functools.partial(jax.jit, static_argnames=("output_size",))
def fully_connected_forward(x, w_slab, b_slab, *, output_size):
    """x: (batch, input_size) f32.  w_slab: (4,128,128) bf16.  b_slab: (8,128) f32."""
    batch, input_size = x.shape
    assert input_size <= LANE and output_size <= LANE

    # Pad the contraction depth once (zeros) so the layer-1 weight slice is
    # aligned to a bf16 sublane tile (16 rows). Trivial extra HBM bytes.
    k1 = _round_up(input_size, 16)
    if k1 != input_size:
        x = jnp.pad(x, ((0, 0), (0, k1 - input_size)))

    bb = _pick_batch_block(batch)
    grid = (pl.cdiv(batch, bb),)

    return pl.pallas_call(
        functools.partial(_mlp_kernel, k1=k1, output_size=output_size),
        out_shape=jax.ShapeDtypeStruct((batch, output_size), jnp.float32),
        grid=grid,
        in_specs=[
            # x: blocked over batch rows only.
            pl.BlockSpec((bb, k1), lambda i: (i, 0)),
            # weight slab: same block every step -> DMA'd once, stays resident.
            pl.BlockSpec((NUM_LAYERS, LANE, LANE), lambda i: (0, 0, 0)),
            # bias slab: tiny, resident.
            pl.BlockSpec((BIAS_ROWS, LANE), lambda i: (0, 0)),
        ],
        # Narrow, directly-useful output: no wrapper slice, no 64x writeback.
        out_specs=pl.BlockSpec((bb, output_size), lambda i: (i, 0)),
        compiler_params=pltpu.CompilerParams(
            dimension_semantics=("parallel",),
        ),
    )(x, w_slab, b_slab)


# ----------------------------------------------------------------------------
# Parameter init (PyTorch-equivalent) + one-time packing.
# ----------------------------------------------------------------------------
def _xavier_uniform(key, out_features, in_features):
    # torch.nn.init.xavier_uniform_: U(-a, a), a = sqrt(6 / (fan_in + fan_out))
    a = jnp.sqrt(6.0 / (in_features + out_features))
    return jax.random.uniform(key, (out_features, in_features),
                              minval=-a, maxval=a, dtype=jnp.float32)


def _linear_default_bias(key, out_features, in_features):
    # torch Linear default bias init: U(-1/sqrt(fan_in), 1/sqrt(fan_in))
    bound = 1.0 / jnp.sqrt(jnp.float32(in_features))
    return jax.random.uniform(key, (out_features,),
                              minval=-bound, maxval=bound, dtype=jnp.float32)


def init_params(key, input_size, output_size):
    """PyTorch-style params: dict of (weight(out,in), bias(out,))."""
    ks = jax.random.split(key, 8)
    return {
        "linear1": (_xavier_uniform(ks[0], HIDDEN, input_size),
                    _linear_default_bias(ks[1], HIDDEN, input_size)),
        "linear2": (_xavier_uniform(ks[2], HIDDEN, HIDDEN),
                    _linear_default_bias(ks[3], HIDDEN, HIDDEN)),
        "linear3": (_xavier_uniform(ks[4], HIDDEN, HIDDEN),
                    _linear_default_bias(ks[5], HIDDEN, HIDDEN)),
        "output_layer": (_xavier_uniform(ks[6], output_size, HIDDEN),
                         _linear_default_bias(ks[7], output_size, HIDDEN)),
    }


def pack_params(params):
    """One-time packing into (w_slab bf16 (4,128,128), b_slab f32 (8,128)).

    Plane l of w_slab: W_l transposed to (in, out), zero-padded to (128, 128).
    Row l of b_slab  : bias_l zero-padded to 128 lanes (kept f32).
    Do this ONCE per parameter update, never inside the forward hot path.
    """
    names = ("linear1", "linear2", "linear3", "output_layer")
    w_slab = jnp.zeros((NUM_LAYERS, LANE, LANE), jnp.bfloat16)
    b_slab = jnp.zeros((BIAS_ROWS, LANE), jnp.float32)
    for l, name in enumerate(names):
        w, b = params[name]
        out_f, in_f = w.shape
        assert in_f <= LANE and out_f <= LANE, "feature dims must fit in 128 lanes"
        w_slab = w_slab.at[l, :in_f, :out_f].set(w.T.astype(jnp.bfloat16))
        b_slab = b_slab.at[l, :out_f].set(b.astype(jnp.float32))
    return w_slab, b_slab


# ----------------------------------------------------------------------------
# References: exact PyTorch (f32) math, and one mimicking the kernel numerics.
# ----------------------------------------------------------------------------
def _reference_forward_f32(x, params):
    h = x
    for name in ("linear1", "linear2", "linear3"):
        w, b = params[name]
        h = jnp.maximum(h @ w.T + b, 0.0)
    w, b = params["output_layer"]
    return h @ w.T + b


def _reference_forward_bf16(x, params):
    """Same bf16-operand / f32-accumulate numerics as the kernel."""
    h = x
    for name in ("linear1", "linear2", "linear3"):
        w, b = params[name]
        h = jnp.dot(h.astype(jnp.bfloat16), w.T.astype(jnp.bfloat16),
                    preferred_element_type=jnp.float32) + b
        h = jnp.maximum(h, 0.0)
    w, b = params["output_layer"]
    return jnp.dot(h.astype(jnp.bfloat16), w.T.astype(jnp.bfloat16),
                   preferred_element_type=jnp.float32) + b


if __name__ == "__main__":
    key = jax.random.PRNGKey(0)
    k_param, k_x1, k_x2 = jax.random.split(key, 3)

    # DQN-style sizes: CartPole-like state dim 4, 2 actions.
    input_size, output_size = 4, 2
    params = init_params(k_param, input_size, output_size)
    w_slab, b_slab = pack_params(params)               # one-time packing
    w_slab = jax.block_until_ready(w_slab)
    b_slab = jax.block_until_ready(b_slab)

    # Small batch (typical action-selection call) -> single grid step.
    batch = 8
    x = jax.random.normal(k_x1, (batch, input_size), dtype=jnp.float32)
    out = jax.block_until_ready(
        fully_connected_forward(x, w_slab, b_slab, output_size=output_size))
    assert out.shape == (batch, output_size)
    assert jnp.allclose(out, _reference_forward_bf16(x, params), atol=1e-3, rtol=1e-3)
    assert jnp.allclose(out, _reference_forward_f32(x, params), atol=3e-2, rtol=3e-2)

    # Large batch (replay-batch style) -> >=2 parallel grid steps.
    big_batch = 1024
    xb = jax.random.normal(k_x2, (big_batch, input_size), dtype=jnp.float32)
    outb = jax.block_until_ready(
        fully_connected_forward(xb, w_slab, b_slab, output_size=output_size))
    assert outb.shape == (big_batch, output_size)
    assert jnp.allclose(outb, _reference_forward_bf16(xb, params), atol=1e-3, rtol=1e-3)
    assert jnp.allclose(outb, _reference_forward_f32(xb, params), atol=3e-2, rtol=3e-2)

    print("KERNEL_OK")
</pallas_src>

<mosaic_0001>
module attributes {stable_mosaic.version = 11 : i64} {
  func.func @_mlp_kernel(%arg0: i32, %arg1: memref<8x16xf32, #tpu.memory_space<vmem>>, %arg2: memref<4x128x128xbf16, #tpu.memory_space<vmem>>, %arg3: memref<8x128xf32, #tpu.memory_space<vmem>>, %arg4: memref<8x2xf32, #tpu.memory_space<vmem>>) attributes {dimension_semantics = [#tpu.dimension_semantics<parallel>], iteration_bounds = array<i64: 1>, scalar_prefetch = 0 : i64, scratch_operands = 0 : i64, tpu.core_type = #tpu.core_type<tc>, window_params = [{transform_indices = @transform_0, window_bounds = array<i64: 8, 16>}, {pipeline_mode = #tpu.pipeline_mode<synchronous>, transform_indices = @transform_1, window_bounds = array<i64: 4, 128, 128>}, {pipeline_mode = #tpu.pipeline_mode<synchronous>, transform_indices = @transform_2, window_bounds = array<i64: 8, 128>}, {transform_indices = @transform_3, window_bounds = array<i64: 8, 2>}]} {
    %c0 = arith.constant 0 : index
    %c0_0 = arith.constant 0 : index
    %0 = vector.load %arg1[%c0, %c0_0] : memref<8x16xf32, #tpu.memory_space<vmem>>, vector<8x16xf32>
    %1 = arith.truncf %0 : vector<8x16xf32> to vector<8x16xbf16>
    %c0_1 = arith.constant 0 : index
    %c0_2 = arith.constant 0 : index
    %c0_3 = arith.constant 0 : index
    %2 = vector.load %arg2[%c0_1, %c0_2, %c0_3] : memref<4x128x128xbf16, #tpu.memory_space<vmem>>, vector<1x16x128xbf16>
    %3 = vector.shape_cast %2 : vector<1x16x128xbf16> to vector<16x128xbf16>
    %cst = arith.constant dense<0.000000e+00> : vector<8x128xf32>
    %4 = tpu.matmul %1, %3, %cst {dimension_numbers = #tpu.dot_dimension_numbers<[1], [0], [0], [1], [0, 0, 1, 1], [], []>} : vector<8x16xbf16>, vector<16x128xbf16>, vector<8x128xf32> -> vector<8x128xf32>
    %c0_4 = arith.constant 0 : index
    %c0_5 = arith.constant 0 : index
    %5 = vector.load %arg3[%c0_4, %c0_5] : memref<8x128xf32, #tpu.memory_space<vmem>>, vector<1x128xf32>
    %6 = vector.broadcast %5 : vector<1x128xf32> to vector<8x128xf32>
    %7 = arith.addf %4, %6 : vector<8x128xf32>
    %cst_6 = arith.constant 0.000000e+00 : f32
    %8 = vector.broadcast %cst_6 : f32 to vector<8x128xf32>
    %9 = arith.maximumf %7, %8 : vector<8x128xf32>
    %10 = arith.truncf %9 : vector<8x128xf32> to vector<8x128xbf16>
    %c1 = arith.constant 1 : index
    %c0_7 = arith.constant 0 : index
    %c0_8 = arith.constant 0 : index
    %11 = vector.load %arg2[%c1, %c0_7, %c0_8] : memref<4x128x128xbf16, #tpu.memory_space<vmem>>, vector<1x128x128xbf16>
    %12 = vector.shape_cast %11 : vector<1x128x128xbf16> to vector<128x128xbf16>
    %cst_9 = arith.constant dense<0.000000e+00> : vector<8x128xf32>
    %13 = tpu.matmul %10, %12, %cst_9 {dimension_numbers = #tpu.dot_dimension_numbers<[1], [0], [0], [1], [0, 0, 1, 1], [], []>} : vector<8x128xbf16>, vector<128x128xbf16>, vector<8x128xf32> -> vector<8x128xf32>
    %c1_10 = arith.constant 1 : index
    %c0_11 = arith.constant 0 : index
    %14 = vector.load %arg3[%c1_10, %c0_11] : memref<8x128xf32, #tpu.memory_space<vmem>>, vector<1x128xf32>
    %15 = vector.broadcast %14 : vector<1x128xf32> to vector<8x128xf32>
    %16 = arith.addf %13, %15 : vector<8x128xf32>
    %cst_12 = arith.constant 0.000000e+00 : f32
    %17 = vector.broadcast %cst_12 : f32 to vector<8x128xf32>
    %18 = arith.maximumf %16, %17 : vector<8x128xf32>
    %19 = arith.truncf %18 : vector<8x128xf32> to vector<8x128xbf16>
    %c2 = arith.constant 2 : index
    %c0_13 = arith.constant 0 : index
    %c0_14 = arith.constant 0 : index
    %20 = vector.load %arg2[%c2, %c0_13, %c0_14] : memref<4x128x128xbf16, #tpu.memory_space<vmem>>, vector<1x128x128xbf16>
    %21 = vector.shape_cast %20 : vector<1x128x128xbf16> to vector<128x128xbf16>
    %cst_15 = arith.constant dense<0.000000e+00> : vector<8x128xf32>
    %22 = tpu.matmul %19, %21, %cst_15 {dimension_numbers = #tpu.dot_dimension_numbers<[1], [0], [0], [1], [0, 0, 1, 1], [], []>} : vector<8x128xbf16>, vector<128x128xbf16>, vector<8x128xf32> -> vector<8x128xf32>
    %c2_16 = arith.constant 2 : index
    %c0_17 = arith.constant 0 : index
    %23 = vector.load %arg3[%c2_16, %c0_17] : memref<8x128xf32, #tpu.memory_space<vmem>>, vector<1x128xf32>
    %24 = vector.broadcast %23 : vector<1x128xf32> to vector<8x128xf32>
    %25 = arith.addf %22, %24 : vector<8x128xf32>
    %cst_18 = arith.constant 0.000000e+00 : f32
    %26 = vector.broadcast %cst_18 : f32 to vector<8x128xf32>
    %27 = arith.maximumf %25, %26 : vector<8x128xf32>
    %28 = arith.truncf %27 : vector<8x128xf32> to vector<8x128xbf16>
    %c3 = arith.constant 3 : index
    %c0_19 = arith.constant 0 : index
    %c0_20 = arith.constant 0 : index
    %29 = vector.load %arg2[%c3, %c0_19, %c0_20] : memref<4x128x128xbf16, #tpu.memory_space<vmem>>, vector<1x128x128xbf16>
    %30 = vector.shape_cast %29 : vector<1x128x128xbf16> to vector<128x128xbf16>
    %cst_21 = arith.constant dense<0.000000e+00> : vector<8x128xf32>
    %31 = tpu.matmul %28, %30, %cst_21 {dimension_numbers = #tpu.dot_dimension_numbers<[1], [0], [0], [1], [0, 0, 1, 1], [], []>} : vector<8x128xbf16>, vector<128x128xbf16>, vector<8x128xf32> -> vector<8x128xf32>
    %c3_22 = arith.constant 3 : index
    %c0_23 = arith.constant 0 : index
    %32 = vector.load %arg3[%c3_22, %c0_23] : memref<8x128xf32, #tpu.memory_space<vmem>>, vector<1x128xf32>
    %33 = vector.broadcast %32 : vector<1x128xf32> to vector<8x128xf32>
    %34 = arith.addf %31, %33 : vector<8x128xf32>
    %35 = vector.extract_strided_slice %34 {offsets = [0, 0], sizes = [8, 2], strides = [1, 1]} : vector<8x128xf32> to vector<8x2xf32>
    %c0_24 = arith.constant 0 : index
    %c0_25 = arith.constant 0 : index
    %36 = vector.load %arg4[%c0_24, %c0_25] : memref<8x2xf32, #tpu.memory_space<vmem>>, vector<8x2xf32>
    tpu.vector_store %arg4[%c0_24, %c0_25], %35 {strides = array<i32>} : memref<8x2xf32, #tpu.memory_space<vmem>>, vector<8x2xf32>,
    return
  }
  func.func @transform_0(%arg0: i32) -> (i32, i32) {
    %c0_i32 = arith.constant 0 : i32
    %c0_i32_0 = arith.constant 0 : i32
    return %arg0, %c0_i32 : i32, i32
  }
  func.func @transform_1(%arg0: i32) -> (i32, i32, i32) {
    %c0_i32 = arith.constant 0 : i32
    %c0_i32_0 = arith.constant 0 : i32
    %c0_i32_1 = arith.constant 0 : i32
    %c0_i32_2 = arith.constant 0 : i32
    return %c0_i32, %c0_i32_0, %c0_i32_1 : i32, i32, i32
  }
  func.func @transform_2(%arg0: i32) -> (i32, i32) {
    %c0_i32 = arith.constant 0 : i32
    %c0_i32_0 = arith.constant 0 : i32
    %c0_i32_1 = arith.constant 0 : i32
    return %c0_i32, %c0_i32_0 : i32, i32
  }
  func.func @transform_3(%arg0: i32) -> (i32, i32) {
    %c0_i32 = arith.constant 0 : i32
    %c0_i32_0 = arith.constant 0 : i32
    return %arg0, %c0_i32 : i32, i32
  }
}

</mosaic_0001>

<bundles_post_ra>
// kernel: fully_connected_forward.1
= control target key start
LH: loop header
LB: loop body
LE: loop exit
PB: predicated region body
PF: predicated region fallthrough
CT: control target
= control target key end

     0   :  { %8 = vsyncpa [#allocation3], 0  ;;  %s472_s15 = smov [#allocation2]   ;;  %s473_s17 = smov 64   ;;  %s516_s0 = inlined_call_operand.vmem [shape: f32[8,16], index: 0, kind: input, shape index: {}]   ;;  %s517_s1 = inlined_call_operand.hbm [shape: bf16[4,128,128], index: 1, kind: input, shape index: {}]   ;;  %s518_s2 = inlined_call_operand.vmem [shape: f32[8,128], index: 2, kind: input, shape index: {}]   ;;  %s519_s3 = inlined_call_operand.vmem [shape: f32[8,2], index: 3, kind: output, shape index: {}]  }
   0x1   :  { %s15_s14 = sshll.u32 %s517_s1, 4  ;;  %s17_s16 = sshll.u32 %s472_s15, 4  ;;  %s16_s14 = int_to_ptr.hbm [resolvable:$true] %s15_s14  ;;  %s18_s16 = int_to_ptr.vmem [resolvable:$true] %s17_s16 }
   0x2   :  { %s474_s18 = smov 4  }
   0x3   :  { %23 = dma.hbm_to_vmem [thread:$0]  %s16_s14, 4096, %s18_s16, [#allocation3], %s473_s17, %s473_s17, %s474_s18  }
   0x4   :  { %470 = dma.done.wait [#allocation3], 4096  }
   0x5   :  { %471 = vsyncadd [#allocation3], 4294963200  ;;  %v414_v0 = vld [vmem:[#allocation2] sm:$0xff]  ;;  %v422_v2 = vld [vmem:[#allocation2 + $0x78] sm:$0xff]  ;;  %vm43_vm0 = vcmask 130048   ;;  %vm306_vm1 = vcmask 15360  }
   0x6   :  { %v31_v1 = vld [vmem:[%s516_s0] sm:$0xff]  ;;  %54 = vmatpush.bf16.msra.mxu0 %v414_v0  ;;  %129 = vmatpush.bf16.msra.mxu1 %v422_v2  ;;  %v421_v4 = vld [vmem:[#allocation2 + $0x70] sm:$0xff]  ;;  %v420_v5 = vld [vmem:[#allocation2 + $0x68] sm:$0xff] }
   0x7   :  { %v32_v3 = vpack.c.bf16 %v31_v1, %v31_v1  ;;  %v419_v6 = vld [vmem:[#allocation2 + $0x60] sm:$0xff]  ;;  %v418_v7 = vld [vmem:[#allocation2 + $0x58] sm:$0xff]  ;;  %v417_v8 = vld [vmem:[#allocation2 + $0x50] sm:$0xff] }
   0x8   :  { %v416_v9 = vld [vmem:[#allocation2 + $0x48] sm:$0xff]  ;;  %v415_v10 = vld [vmem:[#allocation2 + $0x40] sm:$0xff]  ;;  %v430_v11 = vld [vmem:[#allocation2 + $0xb8] sm:$0xff] }
   0x9   :  { %317 = vmatmul.msk.bf16.vlgmr.msra.gmra.mxu0 %vm43_vm0, %v32_v3  ;;  %211 = vmatpush.bf16.msra.mxu2 %v430_v11  ;;  %v429_v12 = vld [vmem:[#allocation2 + $0xb0] sm:$0xff]  ;;  %v428_v13 = vld [vmem:[#allocation2 + $0xa8] sm:$0xff]  ;;  %v427_v14 = vld [vmem:[#allocation2 + $0xa0] sm:$0xff] }
   0xa   :  { %130 = vmatpush.bf16.msra.mxu1 %v421_v4  ;;  %v426_v15 = vld [vmem:[#allocation2 + $0x98] sm:$0xff]  ;;  %v425_v16 = vld [vmem:[#allocation2 + $0x90] sm:$0xff]  ;;  %v442_v17 = vld [vmem:[%s518_s2] ss:$0 sm:$0xff] }
   0xb   :  { %v424_v23 = vld [vmem:[#allocation2 + $0x88] sm:$0xff]  ;;  %v423_v24 = vld [vmem:[#allocation2 + $0x80] sm:$0xff]  ;;  %v438_v25 = vld [vmem:[#allocation2 + $0xf8] sm:$0xff] }
   0xc   :  { %293 = vmatpush.bf16.msra.mxu3 %v438_v25  ;;  %v437_v26 = vld [vmem:[#allocation2 + $0xf0] sm:$0xff]  ;;  %v436_v27 = vld [vmem:[#allocation2 + $0xe8] sm:$0xff]  ;;  %v435_v28 = vld [vmem:[#allocation2 + $0xe0] sm:$0xff] }
   0xd   :  { %212 = vmatpush.bf16.msra.mxu2 %v429_v12  ;;  %v434_v29 = vld [vmem:[#allocation2 + $0xd8] sm:$0xff]  ;;  %v433_v30 = vld [vmem:[#allocation2 + $0xd0] sm:$0xff]  ;;  %v443_v31 = vld [vmem:[%s518_s2 + $0x1] ss:$0 sm:$0xff] }
   0xe   :  { %131 = vmatpush.bf16.msra.mxu1 %v420_v5  ;;  %v432_v37 = vld [vmem:[#allocation2 + $0xc8] sm:$0xff]  ;;  %v431_v38 = vld [vmem:[#allocation2 + $0xc0] sm:$0xff] }
   0xf   :  { %v444_v39 = vld [vmem:[%s518_s2 + $0x2] ss:$0 sm:$0xff]  ;;  %v445_v45 = vld [vmem:[%s518_s2 + $0x3] ss:$0 sm:$0xff] }
  0x10   :  { %294 = vmatpush.bf16.msra.mxu3 %v437_v26 }
  0x11   :  { %213 = vmatpush.bf16.msra.mxu2 %v428_v13 }
  0x12   :  { %132 = vmatpush.bf16.msra.mxu1 %v419_v6 }
  0x14   :  { %295 = vmatpush.bf16.msra.mxu3 %v436_v27 }
  0x15   :  { %214 = vmatpush.bf16.msra.mxu2 %v427_v14 }
  0x16   :  { %133 = vmatpush.bf16.msra.mxu1 %v418_v7 }
  0x18   :  { %296 = vmatpush.bf16.msra.mxu3 %v435_v28 }
  0x19   :  { %215 = vmatpush.bf16.msra.mxu2 %v426_v15 }
  0x1a   :  { %134 = vmatpush.bf16.msra.mxu1 %v417_v8 }
  0x1c   :  { %297 = vmatpush.bf16.msra.mxu3 %v434_v29 }
  0x1d   :  { %216 = vmatpush.bf16.msra.mxu2 %v425_v16 }
  0x1e   :  { %135 = vmatpush.bf16.msra.mxu1 %v416_v9 }
  0x20   :  { %298 = vmatpush.bf16.msra.mxu3 %v433_v30 }
  0x21   :  { %217 = vmatpush.bf16.msra.mxu2 %v424_v23 }
  0x22   :  { %136 = vmatpush.bf16.msra.mxu1 %v415_v10 }
  0x24   :  { %299 = vmatpush.bf16.msra.mxu3 %v432_v37 }
  0x25   :  { %218 = vmatpush.bf16.msra.mxu2 %v423_v24 }
  0x28   :  { %300 = vmatpush.bf16.msra.mxu3 %v431_v38 }
  0x86   :  { %v56_v18 = vpop.f32.mrf.mxu0 }
  0x87   :  { %v57_v19 = vadd.f32 %v442_v17, %v56_v18 }
  0x89   :  { %v60_v20 = vmax.f32 %v57_v19, 0.0 }
  0x8b   :  { %v61_v21 = vpack.c.bf16 %v60_v20, %v60_v20 }
  0x8d   :  { %137 = vmatmul.bf16.vlgmr.msra.gmra.mxu1 %v61_v21 }
  0x8e   :  { %v58_v22 = vpop.f32.mrf.mxu0 }
 0x10a   :  { %v138_v32 = vpop.f32.mrf.mxu1 }
 0x10b   :  { %v139_v33 = vadd.f32 %v443_v31, %v138_v32 }
 0x10d   :  { %v142_v34 = vmax.f32 %v139_v33, 0.0 }
 0x10f   :  { %v143_v35 = vpack.c.bf16 %v142_v34, %v142_v34 }
 0x111   :  { %219 = vmatmul.bf16.vlgmr.msra.gmra.mxu2 %v143_v35 }
 0x112   :  { %v140_v36 = vpop.f32.mrf.mxu1 }
 0x194   :  { %v220_v40 = vpop.f32.mrf.mxu2 }
 0x195   :  { %v221_v41 = vadd.f32 %v444_v39, %v220_v40 }
 0x197   :  { %v224_v42 = vmax.f32 %v221_v41, 0.0 }
 0x199   :  { %v225_v43 = vpack.c.bf16 %v224_v42, %v224_v42 }
 0x19b   :  { %301 = vmatmul.bf16.vlgmr.msra.gmra.mxu3 %v225_v43 }
 0x19c   :  { %v222_v44 = vpop.f32.mrf.mxu2 }
 0x21e   :  { %v302_v46 = vpop.f32.mrf.mxu3 }
 0x21f   :  { %v303_v47 = vadd.f32 %v445_v45, %v302_v46 }
 0x221   :  { %307 = vst.msk [vmem:[%s519_s3] sm:$0xff] %vm306_vm1, %v303_v47 }
 0x226   :  { %v304_v48 = vpop.f32.mrf.mxu3 }
 0x227   :  { %312 = vsyncpa [#allocation3], 1 }

</bundles_post_ra>
